<compile_context>
chip_gen: v7x
topology: tpu7x:2x2x1
jax: 0.10.0
libtpu: 0.0.40
codegen_flags: <defaults>
</compile_context>

<pallas_src>
import math

import jax
import jax.numpy as jnp
from jax.experimental import pallas as pl
from jax.experimental.pallas import tpu as pltpu  # noqa: F401 (TPU backend)

# ---- model dimensions (small, consistent with the forward signature) -------
M = 8            # batch
HALF = 4         # D // 2
D = 2 * HALF     # feature dim of x
CTX = 4          # context dim
HIDDEN = 32      # conditioner hidden width
N_FLOWS = 4

_LOG_2PI = math.log(2.0 * math.pi)


# ---------------------------- fused Pallas kernel ----------------------------
def _fused_nf_kernel(x_ref, ctx_ref, w1x_ref, w1c_ref, b1f_ref,
                     w2s_ref, b2s_ref, w2t_ref, b2t_ref,
                     z1_ref, z2_ref, z3_ref, z4_ref,
                     plp_ref, ld_ref):
    """All flows + prior log-prob in one kernel (full arrays resident in VMEM).

    Inputs:
      x_ref   : (M, D)
      ctx_ref : (M, CTX)
      w1x_ref : (N_FLOWS, HALF, HIDDEN)        first-layer weights, x part
      w1c_ref : (CTX, N_FLOWS * HIDDEN)        first-layer weights, ctx part
      b1f_ref : (1, N_FLOWS * HIDDEN)          first-layer biases (flattened)
      w2s_ref : (N_FLOWS, HIDDEN, HALF)        second layer -> scale s
      b2s_ref : (N_FLOWS, HALF)
      w2t_ref : (N_FLOWS, HIDDEN, HALF)        second layer -> shift t
      b2t_ref : (N_FLOWS, HALF)
    Outputs:
      z{1..4}_ref : (M, D)   per-flow outputs (zs[0] == x is handled in wrapper)
      plp_ref     : (M, 1)   prior log-prob of zs[-1]
      ld_ref      : (M, 1)   accumulated log_det
    """
    x = x_ref[...]
    ctx = ctx_ref[...]
    z_refs = (z1_ref, z2_ref, z3_ref, z4_ref)

    # Hoisted, off-critical-path: ctx projection (+ b1) for ALL flows as one
    # lane-dense (M, CTX) x (CTX, N_FLOWS*HIDDEN) matmul.
    ctx_b = (jnp.dot(ctx, w1c_ref[...], preferred_element_type=jnp.float32)
             + b1f_ref[...])                                   # (M, NF*HIDDEN)

    w1x = w1x_ref[...]
    w2s = w2s_ref[...]
    w2t = w2t_ref[...]
    b2s = b2s_ref[...]
    b2t = b2t_ref[...]

    # Carry the two halves as separate registers; no per-flow concat/split.
    xl = x[:, :HALF]
    xr = x[:, HALF:]
    log_det = jnp.zeros((x.shape[0], 1), jnp.float32)

    # Statically unrolled flow chain; everything lives in vregs between steps.
    for i in range(N_FLOWS):
        if i % 2 == 0:
            x1, x2 = xl, xr
        else:
            x1, x2 = xr, xl

        h = jnp.tanh(
            jnp.dot(x1, w1x[i], preferred_element_type=jnp.float32)
            + ctx_b[:, i * HIDDEN:(i + 1) * HIDDEN])
        s = (jnp.dot(h, w2s[i], preferred_element_type=jnp.float32)
             + b2s[i:i + 1, :])
        t = (jnp.dot(h, w2t[i], preferred_element_type=jnp.float32)
             + b2t[i:i + 1, :])

        znew = x2 * jnp.exp(s) + t
        if i % 2 == 0:
            xr = znew            # left half (x1) passes through unchanged
        else:
            xl = znew            # right half (x1) passes through unchanged

        # Writeback (off the dependency chain): two direct half stores.
        z_refs[i][:, :HALF] = xl
        z_refs[i][:, HALF:] = xr

        log_det = log_det + jnp.sum(s, axis=1, keepdims=True)

    # prior: standard Normal log-prob summed over features of zs[-1]
    # (matches prior.log_prob(z).view(m, -1).sum(1)); computed on the two
    # halves directly to avoid a final concat.
    plp_ref[...] = (jnp.sum(-0.5 * xl * xl, axis=1, keepdims=True)
                    + jnp.sum(-0.5 * xr * xr, axis=1, keepdims=True)
                    - jnp.float32(0.5 * _LOG_2PI * D))
    ld_ref[...] = log_det


# ------------------------------ wrappers --------------------------------------
def pack_flow_params(flow_params):
    """One-time packing/splitting of per-flow (w1, b1, w2, b2) params."""
    w1 = jnp.stack([p[0] for p in flow_params])            # (NF, HALF+CTX, HIDDEN)
    b1 = jnp.stack([p[1].reshape(-1) for p in flow_params])  # (NF, HIDDEN)
    w2 = jnp.stack([p[2] for p in flow_params])            # (NF, HIDDEN, D)
    b2 = jnp.stack([p[3].reshape(-1) for p in flow_params])  # (NF, D)

    w1x = w1[:, :HALF, :]                                   # (NF, HALF, HIDDEN)
    w1c = jnp.transpose(w1[:, HALF:, :], (1, 0, 2)).reshape(CTX, N_FLOWS * HIDDEN)
    b1f = b1.reshape(1, N_FLOWS * HIDDEN)
    w2s = w2[:, :, :HALF]                                   # (NF, HIDDEN, HALF)
    w2t = w2[:, :, HALF:]                                   # (NF, HIDDEN, HALF)
    b2s = b2[:, :HALF]                                      # (NF, HALF)
    b2t = b2[:, HALF:]                                      # (NF, HALF)
    return (w1x, w1c, b1f, w2s, b2s, w2t, b2t)


@jax.jit
def _fused_forward(x, context, packed):
    w1x, w1c, b1f, w2s, b2s, w2t, b2t = packed
    m = x.shape[0]
    outs = pl.pallas_call(
        _fused_nf_kernel,
        out_shape=tuple(
            [jax.ShapeDtypeStruct((m, D), jnp.float32) for _ in range(N_FLOWS)]
            + [jax.ShapeDtypeStruct((m, 1), jnp.float32),
               jax.ShapeDtypeStruct((m, 1), jnp.float32)]),
    )(x, context, w1x, w1c, b1f, w2s, b2s, w2t, b2t)

    zs = (x,) + tuple(outs[:N_FLOWS])          # zs[0] is the input, as in torch
    prior_logprob = outs[N_FLOWS].reshape(m)
    log_det = outs[N_FLOWS + 1].reshape(m)
    return zs, prior_logprob, log_det


def normalizing_flow_model_forward(x, context, packed_params):
    """Equivalent of NormalizingFlowModel.forward -> (zs, prior_logprob, log_det)."""
    return _fused_forward(x, context, packed_params)


# -------------------------- pure-JAX reference --------------------------------
def _reference_forward(x, context, flow_params):
    m = x.shape[0]
    log_det = jnp.zeros((m,), jnp.float32)
    zs = [x]
    for i, (w1, b1, w2, b2) in enumerate(flow_params):
        parity = i % 2
        if parity:
            x1, x2 = x[:, HALF:], x[:, :HALF]
        else:
            x1, x2 = x[:, :HALF], x[:, HALF:]
        h = jnp.tanh(jnp.concatenate([x1, context], axis=1) @ w1 + b1)
        st = h @ w2 + b2
        s, t = st[:, :HALF], st[:, HALF:]
        z2 = x2 * jnp.exp(s) + t
        x = jnp.concatenate([z2, x1] if parity else [x1, z2], axis=1)
        log_det = log_det + jnp.sum(s, axis=1)
        zs.append(x)
    lp = jnp.sum(-0.5 * zs[-1] ** 2 - 0.5 * _LOG_2PI, axis=1)
    return zs, lp, log_det


# ------------------------------- params ---------------------------------------
def init_flow_params(key):
    params = []
    for _ in range(N_FLOWS):
        key, k1, k2 = jax.random.split(key, 3)
        w1 = 0.1 * jax.random.normal(k1, (HALF + CTX, HIDDEN), jnp.float32)
        b1 = jnp.zeros((1, HIDDEN), jnp.float32)
        w2 = 0.1 * jax.random.normal(k2, (HIDDEN, D), jnp.float32)
        b2 = jnp.zeros((1, D), jnp.float32)
        params.append((w1, b1, w2, b2))
    return params


if __name__ == "__main__":
    key = jax.random.PRNGKey(0)
    kx, kc, kp = jax.random.split(key, 3)
    x = jax.random.normal(kx, (M, D), jnp.float32)
    context = jax.random.normal(kc, (M, CTX), jnp.float32)
    flow_params = init_flow_params(kp)

    packed = pack_flow_params(flow_params)           # one-time packing
    zs, prior_lp, log_det = normalizing_flow_model_forward(x, context, packed)
    jax.block_until_ready(zs[-1])
    jax.block_until_ready(prior_lp)
    jax.block_until_ready(log_det)

    # correctness check against pure-JAX reference
    zs_r, lp_r, ld_r = _reference_forward(x, context, flow_params)
    assert jnp.allclose(jnp.stack(list(zs)), jnp.stack(zs_r), rtol=1e-5, atol=1e-5)
    assert jnp.allclose(prior_lp, lp_r, rtol=1e-5, atol=1e-5)
    assert jnp.allclose(log_det, ld_r, rtol=1e-5, atol=1e-5)

    # TODO(synk): backward() / sample() paths of the module are not implemented
    # (only forward was requested); they would be a mirror-image fused kernel.

    print("KERNEL_OK")
</pallas_src>

<mosaic_0001>
module attributes {stable_mosaic.version = 11 : i64} {
  func.func @_fused_nf_kernel(%arg0: memref<8x8xf32, #tpu.memory_space<vmem>>, %arg1: memref<8x4xf32, #tpu.memory_space<vmem>>, %arg2: memref<4x4x32xf32, #tpu.memory_space<vmem>>, %arg3: memref<4x128xf32, #tpu.memory_space<vmem>>, %arg4: memref<1x128xf32, #tpu.memory_space<vmem>>, %arg5: memref<4x32x4xf32, #tpu.memory_space<vmem>>, %arg6: memref<4x4xf32, #tpu.memory_space<vmem>>, %arg7: memref<4x32x4xf32, #tpu.memory_space<vmem>>, %arg8: memref<4x4xf32, #tpu.memory_space<vmem>>, %arg9: memref<8x8xf32, #tpu.memory_space<vmem>>, %arg10: memref<8x8xf32, #tpu.memory_space<vmem>>, %arg11: memref<8x8xf32, #tpu.memory_space<vmem>>, %arg12: memref<8x8xf32, #tpu.memory_space<vmem>>, %arg13: memref<8x1xf32, #tpu.memory_space<vmem>>, %arg14: memref<8x1xf32, #tpu.memory_space<vmem>>) attributes {dimension_semantics = [], scalar_prefetch = 0 : i64, scratch_operands = 0 : i64, tpu.core_type = #tpu.core_type<tc>} {
    %c0 = arith.constant 0 : index
    %c0_0 = arith.constant 0 : index
    %0 = vector.load %arg0[%c0, %c0_0] : memref<8x8xf32, #tpu.memory_space<vmem>>, vector<8x8xf32>
    %c0_1 = arith.constant 0 : index
    %c0_2 = arith.constant 0 : index
    %1 = vector.load %arg1[%c0_1, %c0_2] : memref<8x4xf32, #tpu.memory_space<vmem>>, vector<8x4xf32>
    %c0_3 = arith.constant 0 : index
    %c0_4 = arith.constant 0 : index
    %2 = vector.load %arg3[%c0_3, %c0_4] : memref<4x128xf32, #tpu.memory_space<vmem>>, vector<4x128xf32>
    %cst = arith.constant dense<0.000000e+00> : vector<8x128xf32>
    %3 = tpu.matmul %1, %2, %cst {dimension_numbers = #tpu.dot_dimension_numbers<[1], [0], [0], [1], [0, 0, 1, 1], [], []>} : vector<8x4xf32>, vector<4x128xf32>, vector<8x128xf32> -> vector<8x128xf32>
    %c0_5 = arith.constant 0 : index
    %c0_6 = arith.constant 0 : index
    %4 = vector.load %arg4[%c0_5, %c0_6] : memref<1x128xf32, #tpu.memory_space<vmem>>, vector<1x128xf32>
    %5 = vector.broadcast %4 : vector<1x128xf32> to vector<8x128xf32>
    %6 = arith.addf %3, %5 : vector<8x128xf32>
    %c0_7 = arith.constant 0 : index
    %c0_8 = arith.constant 0 : index
    %c0_9 = arith.constant 0 : index
    %7 = vector.load %arg2[%c0_7, %c0_8, %c0_9] : memref<4x4x32xf32, #tpu.memory_space<vmem>>, vector<4x4x32xf32>
    %c0_10 = arith.constant 0 : index
    %c0_11 = arith.constant 0 : index
    %c0_12 = arith.constant 0 : index
    %8 = vector.load %arg5[%c0_10, %c0_11, %c0_12] : memref<4x32x4xf32, #tpu.memory_space<vmem>>, vector<4x32x4xf32>
    %c0_13 = arith.constant 0 : index
    %c0_14 = arith.constant 0 : index
    %c0_15 = arith.constant 0 : index
    %9 = vector.load %arg7[%c0_13, %c0_14, %c0_15] : memref<4x32x4xf32, #tpu.memory_space<vmem>>, vector<4x32x4xf32>
    %c0_16 = arith.constant 0 : index
    %c0_17 = arith.constant 0 : index
    %10 = vector.load %arg6[%c0_16, %c0_17] : memref<4x4xf32, #tpu.memory_space<vmem>>, vector<4x4xf32>
    %c0_18 = arith.constant 0 : index
    %c0_19 = arith.constant 0 : index
    %11 = vector.load %arg8[%c0_18, %c0_19] : memref<4x4xf32, #tpu.memory_space<vmem>>, vector<4x4xf32>
    %12 = vector.extract_strided_slice %0 {offsets = [0, 0], sizes = [8, 4], strides = [1, 1]} : vector<8x8xf32> to vector<8x4xf32>
    %13 = vector.extract_strided_slice %0 {offsets = [0, 4], sizes = [8, 4], strides = [1, 1]} : vector<8x8xf32> to vector<8x4xf32>
    %cst_20 = arith.constant 0.000000e+00 : f32
    %14 = vector.broadcast %cst_20 : f32 to vector<8x1xf32>
    %15 = vector.extract_strided_slice %7 {offsets = [0, 0, 0], sizes = [1, 4, 32], strides = [1, 1, 1]} : vector<4x4x32xf32> to vector<1x4x32xf32>
    %16 = vector.shape_cast %15 : vector<1x4x32xf32> to vector<4x32xf32>
    %cst_21 = arith.constant dense<0.000000e+00> : vector<8x32xf32>
    %17 = tpu.matmul %12, %16, %cst_21 {dimension_numbers = #tpu.dot_dimension_numbers<[1], [0], [0], [1], [0, 0, 1, 1], [], []>} : vector<8x4xf32>, vector<4x32xf32>, vector<8x32xf32> -> vector<8x32xf32>
    %18 = vector.extract_strided_slice %6 {offsets = [0, 0], sizes = [8, 32], strides = [1, 1]} : vector<8x128xf32> to vector<8x32xf32>
    %19 = arith.addf %17, %18 : vector<8x32xf32>
    %20 = math.tanh %19 : vector<8x32xf32>
    %21 = vector.extract_strided_slice %8 {offsets = [0, 0, 0], sizes = [1, 32, 4], strides = [1, 1, 1]} : vector<4x32x4xf32> to vector<1x32x4xf32>
    %22 = vector.shape_cast %21 : vector<1x32x4xf32> to vector<32x4xf32>
    %cst_22 = arith.constant dense<0.000000e+00> : vector<8x4xf32>
    %23 = tpu.matmul %20, %22, %cst_22 {dimension_numbers = #tpu.dot_dimension_numbers<[1], [0], [0], [1], [0, 0, 1, 1], [], []>} : vector<8x32xf32>, vector<32x4xf32>, vector<8x4xf32> -> vector<8x4xf32>
    %24 = vector.extract_strided_slice %10 {offsets = [0, 0], sizes = [1, 4], strides = [1, 1]} : vector<4x4xf32> to vector<1x4xf32>
    %25 = vector.broadcast %24 : vector<1x4xf32> to vector<8x4xf32>
    %26 = arith.addf %23, %25 : vector<8x4xf32>
    %27 = vector.extract_strided_slice %9 {offsets = [0, 0, 0], sizes = [1, 32, 4], strides = [1, 1, 1]} : vector<4x32x4xf32> to vector<1x32x4xf32>
    %28 = vector.shape_cast %27 : vector<1x32x4xf32> to vector<32x4xf32>
    %cst_23 = arith.constant dense<0.000000e+00> : vector<8x4xf32>
    %29 = tpu.matmul %20, %28, %cst_23 {dimension_numbers = #tpu.dot_dimension_numbers<[1], [0], [0], [1], [0, 0, 1, 1], [], []>} : vector<8x32xf32>, vector<32x4xf32>, vector<8x4xf32> -> vector<8x4xf32>
    %30 = vector.extract_strided_slice %11 {offsets = [0, 0], sizes = [1, 4], strides = [1, 1]} : vector<4x4xf32> to vector<1x4xf32>
    %31 = vector.broadcast %30 : vector<1x4xf32> to vector<8x4xf32>
    %32 = arith.addf %29, %31 : vector<8x4xf32>
    %33 = math.exp %26 : vector<8x4xf32>
    %34 = arith.mulf %13, %33 : vector<8x4xf32>
    %35 = arith.addf %34, %32 : vector<8x4xf32>
    %c0_24 = arith.constant 0 : index
    %c0_25 = arith.constant 0 : index
    %36 = vector.load %arg9[%c0_24, %c0_25] : memref<8x8xf32, #tpu.memory_space<vmem>>, vector<8x4xf32>
    tpu.vector_store %arg9[%c0_24, %c0_25], %12 {strides = array<i32>} : memref<8x8xf32, #tpu.memory_space<vmem>>, vector<8x4xf32>,
    %c0_26 = arith.constant 0 : index
    %c4 = arith.constant 4 : index
    %37 = vector.load %arg9[%c0_26, %c4] : memref<8x8xf32, #tpu.memory_space<vmem>>, vector<8x4xf32>
    tpu.vector_store %arg9[%c0_26, %c4], %35 {strides = array<i32>} : memref<8x8xf32, #tpu.memory_space<vmem>>, vector<8x4xf32>,
    %cst_27 = arith.constant dense<0.000000e+00> : vector<8xf32>
    %38 = vector.multi_reduction <add>, %26, %cst_27 [1] : vector<8x4xf32> to vector<8xf32>
    %39 = vector.shape_cast %38 : vector<8xf32> to vector<8x1xf32>
    %40 = arith.addf %14, %39 : vector<8x1xf32>
    %41 = vector.extract_strided_slice %7 {offsets = [1, 0, 0], sizes = [1, 4, 32], strides = [1, 1, 1]} : vector<4x4x32xf32> to vector<1x4x32xf32>
    %42 = vector.shape_cast %41 : vector<1x4x32xf32> to vector<4x32xf32>
    %cst_28 = arith.constant dense<0.000000e+00> : vector<8x32xf32>
    %43 = tpu.matmul %35, %42, %cst_28 {dimension_numbers = #tpu.dot_dimension_numbers<[1], [0], [0], [1], [0, 0, 1, 1], [], []>} : vector<8x4xf32>, vector<4x32xf32>, vector<8x32xf32> -> vector<8x32xf32>
    %44 = vector.extract_strided_slice %6 {offsets = [0, 32], sizes = [8, 32], strides = [1, 1]} : vector<8x128xf32> to vector<8x32xf32>
    %45 = arith.addf %43, %44 : vector<8x32xf32>
    %46 = math.tanh %45 : vector<8x32xf32>
    %47 = vector.extract_strided_slice %8 {offsets = [1, 0, 0], sizes = [1, 32, 4], strides = [1, 1, 1]} : vector<4x32x4xf32> to vector<1x32x4xf32>
    %48 = vector.shape_cast %47 : vector<1x32x4xf32> to vector<32x4xf32>
    %cst_29 = arith.constant dense<0.000000e+00> : vector<8x4xf32>
    %49 = tpu.matmul %46, %48, %cst_29 {dimension_numbers = #tpu.dot_dimension_numbers<[1], [0], [0], [1], [0, 0, 1, 1], [], []>} : vector<8x32xf32>, vector<32x4xf32>, vector<8x4xf32> -> vector<8x4xf32>
    %50 = vector.extract_strided_slice %10 {offsets = [1, 0], sizes = [1, 4], strides = [1, 1]} : vector<4x4xf32> to vector<1x4xf32>
    %51 = vector.broadcast %50 : vector<1x4xf32> to vector<8x4xf32>
    %52 = arith.addf %49, %51 : vector<8x4xf32>
    %53 = vector.extract_strided_slice %9 {offsets = [1, 0, 0], sizes = [1, 32, 4], strides = [1, 1, 1]} : vector<4x32x4xf32> to vector<1x32x4xf32>
    %54 = vector.shape_cast %53 : vector<1x32x4xf32> to vector<32x4xf32>
    %cst_30 = arith.constant dense<0.000000e+00> : vector<8x4xf32>
    %55 = tpu.matmul %46, %54, %cst_30 {dimension_numbers = #tpu.dot_dimension_numbers<[1], [0], [0], [1], [0, 0, 1, 1], [], []>} : vector<8x32xf32>, vector<32x4xf32>, vector<8x4xf32> -> vector<8x4xf32>
    %56 = vector.extract_strided_slice %11 {offsets = [1, 0], sizes = [1, 4], strides = [1, 1]} : vector<4x4xf32> to vector<1x4xf32>
    %57 = vector.broadcast %56 : vector<1x4xf32> to vector<8x4xf32>
    %58 = arith.addf %55, %57 : vector<8x4xf32>
    %59 = math.exp %52 : vector<8x4xf32>
    %60 = arith.mulf %12, %59 : vector<8x4xf32>
    %61 = arith.addf %60, %58 : vector<8x4xf32>
    %c0_31 = arith.constant 0 : index
    %c0_32 = arith.constant 0 : index
    %62 = vector.load %arg10[%c0_31, %c0_32] : memref<8x8xf32, #tpu.memory_space<vmem>>, vector<8x4xf32>
    tpu.vector_store %arg10[%c0_31, %c0_32], %61 {strides = array<i32>} : memref<8x8xf32, #tpu.memory_space<vmem>>, vector<8x4xf32>,
    %c0_33 = arith.constant 0 : index
    %c4_34 = arith.constant 4 : index
    %63 = vector.load %arg10[%c0_33, %c4_34] : memref<8x8xf32, #tpu.memory_space<vmem>>, vector<8x4xf32>
    tpu.vector_store %arg10[%c0_33, %c4_34], %35 {strides = array<i32>} : memref<8x8xf32, #tpu.memory_space<vmem>>, vector<8x4xf32>,
    %cst_35 = arith.constant dense<0.000000e+00> : vector<8xf32>
    %64 = vector.multi_reduction <add>, %52, %cst_35 [1] : vector<8x4xf32> to vector<8xf32>
    %65 = vector.shape_cast %64 : vector<8xf32> to vector<8x1xf32>
    %66 = arith.addf %40, %65 : vector<8x1xf32>
    %67 = vector.extract_strided_slice %7 {offsets = [2, 0, 0], sizes = [1, 4, 32], strides = [1, 1, 1]} : vector<4x4x32xf32> to vector<1x4x32xf32>
    %68 = vector.shape_cast %67 : vector<1x4x32xf32> to vector<4x32xf32>
    %cst_36 = arith.constant dense<0.000000e+00> : vector<8x32xf32>
    %69 = tpu.matmul %61, %68, %cst_36 {dimension_numbers = #tpu.dot_dimension_numbers<[1], [0], [0], [1], [0, 0, 1, 1], [], []>} : vector<8x4xf32>, vector<4x32xf32>, vector<8x32xf32> -> vector<8x32xf32>
    %70 = vector.extract_strided_slice %6 {offsets = [0, 64], sizes = [8, 32], strides = [1, 1]} : vector<8x128xf32> to vector<8x32xf32>
    %71 = arith.addf %69, %70 : vector<8x32xf32>
    %72 = math.tanh %71 : vector<8x32xf32>
    %73 = vector.extract_strided_slice %8 {offsets = [2, 0, 0], sizes = [1, 32, 4], strides = [1, 1, 1]} : vector<4x32x4xf32> to vector<1x32x4xf32>
    %74 = vector.shape_cast %73 : vector<1x32x4xf32> to vector<32x4xf32>
    %cst_37 = arith.constant dense<0.000000e+00> : vector<8x4xf32>
    %75 = tpu.matmul %72, %74, %cst_37 {dimension_numbers = #tpu.dot_dimension_numbers<[1], [0], [0], [1], [0, 0, 1, 1], [], []>} : vector<8x32xf32>, vector<32x4xf32>, vector<8x4xf32> -> vector<8x4xf32>
    %76 = vector.extract_strided_slice %10 {offsets = [2, 0], sizes = [1, 4], strides = [1, 1]} : vector<4x4xf32> to vector<1x4xf32>
    %77 = vector.broadcast %76 : vector<1x4xf32> to vector<8x4xf32>
    %78 = arith.addf %75, %77 : vector<8x4xf32>
    %79 = vector.extract_strided_slice %9 {offsets = [2, 0, 0], sizes = [1, 32, 4], strides = [1, 1, 1]} : vector<4x32x4xf32> to vector<1x32x4xf32>
    %80 = vector.shape_cast %79 : vector<1x32x4xf32> to vector<32x4xf32>
    %cst_38 = arith.constant dense<0.000000e+00> : vector<8x4xf32>
    %81 = tpu.matmul %72, %80, %cst_38 {dimension_numbers = #tpu.dot_dimension_numbers<[1], [0], [0], [1], [0, 0, 1, 1], [], []>} : vector<8x32xf32>, vector<32x4xf32>, vector<8x4xf32> -> vector<8x4xf32>
    %82 = vector.extract_strided_slice %11 {offsets = [2, 0], sizes = [1, 4], strides = [1, 1]} : vector<4x4xf32> to vector<1x4xf32>
    %83 = vector.broadcast %82 : vector<1x4xf32> to vector<8x4xf32>
    %84 = arith.addf %81, %83 : vector<8x4xf32>
    %85 = math.exp %78 : vector<8x4xf32>
    %86 = arith.mulf %35, %85 : vector<8x4xf32>
    %87 = arith.addf %86, %84 : vector<8x4xf32>
    %c0_39 = arith.constant 0 : index
    %c0_40 = arith.constant 0 : index
    %88 = vector.load %arg11[%c0_39, %c0_40] : memref<8x8xf32, #tpu.memory_space<vmem>>, vector<8x4xf32>
    tpu.vector_store %arg11[%c0_39, %c0_40], %61 {strides = array<i32>} : memref<8x8xf32, #tpu.memory_space<vmem>>, vector<8x4xf32>,
    %c0_41 = arith.constant 0 : index
    %c4_42 = arith.constant 4 : index
    %89 = vector.load %arg11[%c0_41, %c4_42] : memref<8x8xf32, #tpu.memory_space<vmem>>, vector<8x4xf32>
    tpu.vector_store %arg11[%c0_41, %c4_42], %87 {strides = array<i32>} : memref<8x8xf32, #tpu.memory_space<vmem>>, vector<8x4xf32>,
    %cst_43 = arith.constant dense<0.000000e+00> : vector<8xf32>
    %90 = vector.multi_reduction <add>, %78, %cst_43 [1] : vector<8x4xf32> to vector<8xf32>
    %91 = vector.shape_cast %90 : vector<8xf32> to vector<8x1xf32>
    %92 = arith.addf %66, %91 : vector<8x1xf32>
    %93 = vector.extract_strided_slice %7 {offsets = [3, 0, 0], sizes = [1, 4, 32], strides = [1, 1, 1]} : vector<4x4x32xf32> to vector<1x4x32xf32>
    %94 = vector.shape_cast %93 : vector<1x4x32xf32> to vector<4x32xf32>
    %cst_44 = arith.constant dense<0.000000e+00> : vector<8x32xf32>
    %95 = tpu.matmul %87, %94, %cst_44 {dimension_numbers = #tpu.dot_dimension_numbers<[1], [0], [0], [1], [0, 0, 1, 1], [], []>} : vector<8x4xf32>, vector<4x32xf32>, vector<8x32xf32> -> vector<8x32xf32>
    %96 = vector.extract_strided_slice %6 {offsets = [0, 96], sizes = [8, 32], strides = [1, 1]} : vector<8x128xf32> to vector<8x32xf32>
    %97 = arith.addf %95, %96 : vector<8x32xf32>
    %98 = math.tanh %97 : vector<8x32xf32>
    %99 = vector.extract_strided_slice %8 {offsets = [3, 0, 0], sizes = [1, 32, 4], strides = [1, 1, 1]} : vector<4x32x4xf32> to vector<1x32x4xf32>
    %100 = vector.shape_cast %99 : vector<1x32x4xf32> to vector<32x4xf32>
    %cst_45 = arith.constant dense<0.000000e+00> : vector<8x4xf32>
    %101 = tpu.matmul %98, %100, %cst_45 {dimension_numbers = #tpu.dot_dimension_numbers<[1], [0], [0], [1], [0, 0, 1, 1], [], []>} : vector<8x32xf32>, vector<32x4xf32>, vector<8x4xf32> -> vector<8x4xf32>
    %102 = vector.extract_strided_slice %10 {offsets = [3, 0], sizes = [1, 4], strides = [1, 1]} : vector<4x4xf32> to vector<1x4xf32>
    %103 = vector.broadcast %102 : vector<1x4xf32> to vector<8x4xf32>
    %104 = arith.addf %101, %103 : vector<8x4xf32>
    %105 = vector.extract_strided_slice %9 {offsets = [3, 0, 0], sizes = [1, 32, 4], strides = [1, 1, 1]} : vector<4x32x4xf32> to vector<1x32x4xf32>
    %106 = vector.shape_cast %105 : vector<1x32x4xf32> to vector<32x4xf32>
    %cst_46 = arith.constant dense<0.000000e+00> : vector<8x4xf32>
    %107 = tpu.matmul %98, %106, %cst_46 {dimension_numbers = #tpu.dot_dimension_numbers<[1], [0], [0], [1], [0, 0, 1, 1], [], []>} : vector<8x32xf32>, vector<32x4xf32>, vector<8x4xf32> -> vector<8x4xf32>
    %108 = vector.extract_strided_slice %11 {offsets = [3, 0], sizes = [1, 4], strides = [1, 1]} : vector<4x4xf32> to vector<1x4xf32>
    %109 = vector.broadcast %108 : vector<1x4xf32> to vector<8x4xf32>
    %110 = arith.addf %107, %109 : vector<8x4xf32>
    %111 = math.exp %104 : vector<8x4xf32>
    %112 = arith.mulf %61, %111 : vector<8x4xf32>
    %113 = arith.addf %112, %110 : vector<8x4xf32>
    %c0_47 = arith.constant 0 : index
    %c0_48 = arith.constant 0 : index
    %114 = vector.load %arg12[%c0_47, %c0_48] : memref<8x8xf32, #tpu.memory_space<vmem>>, vector<8x4xf32>
    tpu.vector_store %arg12[%c0_47, %c0_48], %113 {strides = array<i32>} : memref<8x8xf32, #tpu.memory_space<vmem>>, vector<8x4xf32>,
    %c0_49 = arith.constant 0 : index
    %c4_50 = arith.constant 4 : index
    %115 = vector.load %arg12[%c0_49, %c4_50] : memref<8x8xf32, #tpu.memory_space<vmem>>, vector<8x4xf32>
    tpu.vector_store %arg12[%c0_49, %c4_50], %87 {strides = array<i32>} : memref<8x8xf32, #tpu.memory_space<vmem>>, vector<8x4xf32>,
    %cst_51 = arith.constant dense<0.000000e+00> : vector<8xf32>
    %116 = vector.multi_reduction <add>, %104, %cst_51 [1] : vector<8x4xf32> to vector<8xf32>
    %117 = vector.shape_cast %116 : vector<8xf32> to vector<8x1xf32>
    %118 = arith.addf %92, %117 : vector<8x1xf32>
    %cst_52 = arith.constant -5.000000e-01 : f32
    %119 = vector.broadcast %cst_52 : f32 to vector<8x4xf32>
    %120 = arith.mulf %119, %113 : vector<8x4xf32>
    %121 = arith.mulf %120, %113 : vector<8x4xf32>
    %cst_53 = arith.constant dense<0.000000e+00> : vector<8xf32>
    %122 = vector.multi_reduction <add>, %121, %cst_53 [1] : vector<8x4xf32> to vector<8xf32>
    %123 = vector.shape_cast %122 : vector<8xf32> to vector<8x1xf32>
    %cst_54 = arith.constant -5.000000e-01 : f32
    %124 = vector.broadcast %cst_54 : f32 to vector<8x4xf32>
    %125 = arith.mulf %124, %87 : vector<8x4xf32>
    %126 = arith.mulf %125, %87 : vector<8x4xf32>
    %cst_55 = arith.constant dense<0.000000e+00> : vector<8xf32>
    %127 = vector.multi_reduction <add>, %126, %cst_55 [1] : vector<8x4xf32> to vector<8xf32>
    %128 = vector.shape_cast %127 : vector<8xf32> to vector<8x1xf32>
    %129 = arith.addf %123, %128 : vector<8x1xf32>
    %cst_56 = arith.constant 7.35150814 : f32
    %130 = vector.broadcast %cst_56 : f32 to vector<8x1xf32>
    %131 = arith.subf %129, %130 : vector<8x1xf32>
    %c0_57 = arith.constant 0 : index
    %c0_58 = arith.constant 0 : index
    %132 = vector.load %arg13[%c0_57, %c0_58] : memref<8x1xf32, #tpu.memory_space<vmem>>, vector<8x1xf32>
    tpu.vector_store %arg13[%c0_57, %c0_58], %131 {strides = array<i32>} : memref<8x1xf32, #tpu.memory_space<vmem>>, vector<8x1xf32>,
    %c0_59 = arith.constant 0 : index
    %c0_60 = arith.constant 0 : index
    %133 = vector.load %arg14[%c0_59, %c0_60] : memref<8x1xf32, #tpu.memory_space<vmem>>, vector<8x1xf32>
    tpu.vector_store %arg14[%c0_59, %c0_60], %118 {strides = array<i32>} : memref<8x1xf32, #tpu.memory_space<vmem>>, vector<8x1xf32>,
    return
  }
}

</mosaic_0001>

<bundles_post_ra>
// kernel: _fused_forward.1
= control target key start
LH: loop header
LB: loop body
LE: loop exit
PB: predicated region body
PF: predicated region fallthrough
CT: control target
= control target key end

     0   :  { %20 = vsyncpa [#allocation3], 0  ;;  %s1989_s0 = inlined_call_operand.vmem [shape: f32[8,8], index: 0, kind: input, shape index: {}]   ;;  %s1990_s1 = inlined_call_operand.vmem [shape: f32[8,4], index: 1, kind: input, shape index: {}]   ;;  %s1991_s2 = inlined_call_operand.vmem [shape: f32[4,4,32], index: 2, kind: input, shape index: {}]   ;;  %s1992_s3 = inlined_call_operand.vmem [shape: f32[4,128], index: 3, kind: input, shape index: {}]   ;;  %s1993_s4 = inlined_call_operand.vmem [shape: f32[1,128], index: 4, kind: input, shape index: {}]   ;;  %s1994_s5 = inlined_call_operand.vmem [shape: f32[4,32,4], index: 5, kind: input, shape index: {}]   ;;  %s1995_s6 = inlined_call_operand.vmem [shape: f32[4,4], index: 6, kind: input, shape index: {}]   ;;  %s1996_s7 = inlined_call_operand.vmem [shape: f32[4,32,4], index: 7, kind: input, shape index: {}]   ;;  %s1997_s8 = inlined_call_operand.vmem [shape: f32[4,4], index: 8, kind: input, shape index: {}]   ;;  %s1998_s9 = inlined_call_operand.hbm [shape: f32[8,8], index: 9, kind: output, shape index: {0}]   ;;  %s1999_s10 = inlined_call_operand.hbm [shape: f32[8,8], index: 10, kind: output, shape index: {1}]   ;;  %s2000_s11 = inlined_call_operand.hbm [shape: f32[8,8], index: 11, kind: output, shape index: {2}]   ;;  %s2001_s12 = inlined_call_operand.hbm [shape: f32[8,8], index: 12, kind: output, shape index: {3}]   ;;  %s2002_s13 = inlined_call_operand.vmem [shape: f32[8,1], index: 13, kind: output, shape index: {4}]   ;;  %s2003_s14 = inlined_call_operand.vmem [shape: f32[8,1], index: 14, kind: output, shape index: {5}]  }
   0x1   :  { %21 = vsyncpa [#allocation5], 0  ;;  %v43_v0 = vld [vmem:[%s1992_s3] sm:$0xf]  ;;  %vm55_vm0 = vcmask 1043456   ;;  %v1586_v2 = vmov 0.0  }
   0x2   :  { %v42_v1 = vld [vmem:[%s1990_s1] sm:$0xff]  ;;  %1303 = vmatprep.subr.mxu0 %v1586_v2  ;;  %vm1587_vm1 = vmmov 0   ;;  %vm51_vm2 = vcmask 31744   ;;  %1308 = vmatprep.subr.mxu1 %v1586_v2 }
   0x3   :  { %1305 = vmatprep.mubr.msk.f32.mxu0 %vm1587_vm1, %v1586_v2  ;;  %v129_v3 = vld [vmem:[%s1991_s2] sm:$0xf]  ;;  %1304 = vmatpush3.msk.msra.mxu0 %vm55_vm0, %v43_v0 }
   0x4   :  { %v1688_v4 = vld [vmem:[%s1989_s0] sm:$0xff] }
   0x5   :  { %408 = vst.msk [vmem:[#allocation2] sm:$0xff] %vm51_vm2, %v1688_v4 }
   0x6   :  { %22 = vsyncpa [#allocation8], 0  ;;  %1306 = vmatmul.mubr.msk.f32.vlgmr.msra.gmra.mrb[0].mxu0 %vm51_vm2, %v42_v1  ;;  %1309 = vmatpush3.msk.msra.mxu1 %vm55_vm0, %v129_v3  ;;  %v133_v5 = vld [vmem:[%s1994_s5] sm:$0xff]  ;;  %v134_v6 = vld [vmem:[%s1994_s5 + $0x8] sm:$0xff]  ;;  %v1588_v8 = vmov 0.0|0.0   ;;  %vm248_vm3 = vcmask 261120   ;;  %v244_v26 = vlaneseq }
   0x7   :  { %1310 = vmatprep.mubr.msk.f32.mxu1 %vm1587_vm1, %v1586_v2  ;;  %1321 = vmatprep.mubr.msk.f32.mxu0 %vm1587_vm1, %v1586_v2  ;;  %v149_v7 = vld [vmem:[%s1996_s7] sm:$0xff]  ;;  %v1417_v9 = vpack.c.bf16 %v134_v6, %v133_v5  ;;  %v150_v10 = vld [vmem:[%s1996_s7 + $0x8] sm:$0xff]  ;;  %v135_v11 = vld [vmem:[%s1994_s5 + $0x10] sm:$0xff]  ;;  %s1590_s22 = smov 64   ;;  %vm409_vm4 = vcmask 64544   ;;  %s1592_s23 = smov 96  }
   0x8   :  { %1311 = vmatmul.mubr.msk.f32.vlgmr.msra.gmra.mrb[0].mxu1 %vm51_vm2, %v1688_v4  ;;  %1416 = vmatprep.subr.bf16.mxu0 %v1588_v8  ;;  %v136_v12 = vld [vmem:[%s1994_s5 + $0x18] sm:$0xff]  ;;  %v1423_v13 = vpack.c.bf16 %v150_v10, %v149_v7  ;;  %v151_v14 = vld [vmem:[%s1996_s7 + $0x10] sm:$0xff]  ;;  %v1233_v18 = vld [vmem:[%s1993_s4] ss:$0 sm:$0xff]  ;;  %v1746_v27 = vshrl.u32 %v244_v26, 7  ;;  %s1593_s0 = smov 32  }
   0x9   :  { %1332 = vmatprep.mubr.msk.f32.mxu1 %vm1587_vm1, %v1586_v2  ;;  %1422 = vmatprep.subr.bf16.mxu1 %v1588_v8  ;;  %v152_v15 = vld [vmem:[%s1996_s7 + $0x18] sm:$0xff]  ;;  %v1420_v16 = vpack.c.bf16 %v136_v12, %v135_v11  ;;  %v1752_v29 = vld [vmem:[%s1995_s6] sm:$0xf]  ;;  %v130_v38 = vld [vmem:[%s1991_s2 + $0x4] sm:$0xf]  ;;  %s1589_s6 = smov 4  }
   0xa   :  { %1418 = vmatpush3.bf16.msra.mxu0 %v1417_v9  ;;  %1424 = vmatpush3.bf16.msra.mxu1 %v1423_v13  ;;  %v1426_v17 = vpack.c.bf16 %v152_v15, %v151_v14  ;;  %v246_v28 = vsub.s32 0, %v1746_v27  ;;  %v1761_v37 = vld [vmem:[%s1997_s8] sm:$0xf]  ;;  %s1591_s8 = smov 124   ;;  %v138_v48 = vld [vmem:[%s1994_s5 + $0x28] sm:$0xff]  ;;  %v139_v52 = vld [vmem:[%s1994_s5 + $0x30] sm:$0xff] }
   0xb   :  { %1419 = vmatprep.subr.bf16.mxu0 %v1588_v8  ;;  %1425 = vmatprep.subr.bf16.mxu1 %v1588_v8  ;;  %v137_v47 = vld [vmem:[%s1994_s5 + $0x20] sm:$0xff]  ;;  %v154_v51 = vld [vmem:[%s1996_s7 + $0x28] sm:$0xff]  ;;  %v140_v53 = vld [vmem:[%s1994_s5 + $0x38] sm:$0xff]  ;;  %v500_v1 = vsub.s32 1, %v1746_v27  ;;  %s1595_s18 = smov [#allocation2]  }
   0xc   :  { %v247_v30 = vrot.slane %v1752_v29, %v246_v28  ;;  %v325_v39 = vrot.slane %v1761_v37, %v246_v28  ;;  %v153_v49 = vld [vmem:[%s1996_s7 + $0x20] sm:$0xff]  ;;  %v1429_v50 = vpack.c.bf16 %v138_v48, %v137_v47  ;;  %v155_v55 = vld [vmem:[%s1996_s7 + $0x30] sm:$0xff]  ;;  %v156_v56 = vld [vmem:[%s1996_s7 + $0x38] sm:$0xff]  ;;  %v1432_v57 = vpack.c.bf16 %v140_v53, %v139_v52  ;;  %s1176_s19 = sshll.u32 %s1595_s18, 4  ;;  %s1177_s19 = int_to_ptr.vmem [resolvable:$true] %s1176_s19 }
   0xd   :  { %v1435_v54 = vpack.c.bf16 %v154_v51, %v153_v49  ;;  %v1438_v58 = vpack.c.bf16 %v156_v56, %v155_v55  ;;  %v131_v0 = vld [vmem:[%s1991_s2 + $0x8] sm:$0xf]  ;;  %v501_v3 = vrot.slane %v1752_v29, %v500_v1  ;;  %v578_v12 = vrot.slane %v1761_v37, %v500_v1  ;;  %v160_v26 = vld [vmem:[%s1996_s7 + $0x58] sm:$0xff]  ;;  %v132_v52 = vld [vmem:[%s1991_s2 + $0xc] sm:$0xf] }
   0xe   :  { %1421 = vmatpush3.bf16.msra.mxu0 %v1420_v16  ;;  %1427 = vmatpush3.bf16.msra.mxu1 %v1426_v17  ;;  %v142_v17 = vld [vmem:[%s1994_s5 + $0x48] sm:$0xff]  ;;  %v163_v1 = vld [vmem:[%s1996_s7 + $0x70] sm:$0xff] }
   0xf   :  { %1335 = vmatprep.subr.mxu0 %v1586_v2  ;;  %1428 = vmatprep.subr.bf16.mxu1 %v1588_v8 }
  0xd9   :  { %v125_v19 = vpop.f32.mrb[0].mxu0 }
  0xda   :  { %v1737_v20 = vadd.f32 %v1233_v18, %v125_v19  ;;  %v1307_v21 = vpop.f32.mrb[1].mxu0  ;;  %v157_v18 = vld [vmem:[%s1996_s7 + $0x40] sm:$0xff] }
  0xdb   :  { %v239_v22 = vpop.f32.mrb[0].mxu1  ;;  %v158_v21 = vld [vmem:[%s1996_s7 + $0x48] sm:$0xff] }
  0xdc   :  { %v240_v23 = vadd.f32 %v239_v22, %v1737_v20  ;;  %v1312_v24 = vpop.f32.mrb[1].mxu1  ;;  %v143_v22 = vld [vmem:[%s1994_s5 + $0x50] sm:$0xff] }
  0xdd   :  { %v1447_v24 = vpack.c.bf16 %v158_v21, %v157_v18 }
  0xde   :  { %1476 = vtanh.f32 %v240_v23  ;;  %v144_v23 = vld [vmem:[%s1994_s5 + $0x58] sm:$0xff] }
  0xdf   :  { %v1444_v28 = vpack.c.bf16 %v144_v23, %v143_v22 }
  0xe8   :  { %v1477_v25 = vpop.eup %1476 }
  0xe9   :  { %1322 = vmatmul.mubr.msk.f32.vlgmr.msra.gmra.mrb[2].mxu0 %vm248_vm3, %v1477_v25  ;;  %1333 = vmatmul.mubr.msk.f32.vlgmr.msra.gmra.mrb[2].mxu1 %vm248_vm3, %v1477_v25  ;;  %v159_v25 = vld [vmem:[%s1996_s7 + $0x50] sm:$0xff] }
  0xea   :  { %1337 = vmatprep.mubr.msk.f32.mxu0 %vm1587_vm1, %v1586_v2  ;;  %1348 = vmatprep.mubr.msk.f32.mxu1 %vm1587_vm1, %v1586_v2 }
  0xeb   :  { %1336 = vmatpush3.msk.msra.mxu0 %vm55_vm0, %v130_v38  ;;  %1430 = vmatpush3.bf16.msra.mxu1 %v1429_v50  ;;  %v741_v38 = vsub.s32 2, %v1746_v27 }
  0xec   :  { %1434 = vmatprep.subr.bf16.mxu0 %v1588_v8  ;;  %1431 = vmatprep.subr.bf16.mxu1 %v1588_v8 }
  0xef   :  { %1433 = vmatpush3.bf16.msra.mxu1 %v1432_v57 }
  0xf0   :  { %1362 = vmatprep.subr.mxu1 %v1586_v2 }
 0x1bc   :  { %v318_v31 = vpop.f32.mrb[2].mxu0  ;;  %v392_v32 = vpop.f32.mrb[2].mxu1 }
 0x1bd   :  { %v1755_v33 = vadd.f32 %v318_v31, %v247_v30  ;;  %v1323_v34 = vpop.f32.mrb[3].mxu0  ;;  %v1334_v35 = vpop.f32.mrb[3].mxu1  ;;  %v393_v41 = vadd.f32 %v392_v32, %v325_v39  ;;  %v1450_v30 = vpack.c.bf16 %v160_v26, %v159_v25  ;;  %v742_v39 = vrot.slane %v1752_v29, %v741_v38 }
 0x1bf   :  { %v396_v36 = vmul.f32 1.442695, %v1755_v33  ;;  %v411_v50 = vsel %vm51_vm2, %v1755_v33, 0.0 }
 0x1c1   :  { %1478 = vpow2.f32 %v396_v36 }
 0x1cb   :  { %v1479_v40 = vpop.eup %1478 }
 0x1cc   :  { %399 = vrot.lane.b32.xlu0 %v1479_v40, %s1589_s6  ;;  %v819_v40 = vrot.slane %v1761_v37, %v741_v38 }
 0x1d0   :  { %404 = vrot.lane.b32.xlu0 %v393_v41, %s1589_s6 }
 0x1d4   :  { %659 = vrot.lane.b32.xlu0 %v1737_v20, %s1590_s22 }
 0x23e   :  { %v400_v42 = vpop.permute.xlu0 %399 }
 0x23f   :  { %v402_v43 = vmul.f32 %v400_v42, %v1688_v4 }
 0x242   :  { %v405_v44 = vpop.permute.xlu0 %404 }
 0x243   :  { %v1773_v45 = vadd.f32 %v405_v44, %v402_v43 }
 0x245   :  { %416 = vrot.lane.b32.xlu1 %v1773_v45, %s1591_s8  ;;  %410 = vst.msk [vmem:[#allocation2] sm:$0xff] %vm409_vm4, %v1773_v45 }
 0x246   :  { %v660_v31 = vpop.permute.xlu0 %659 }
 0x249   :  { %419 = vrot.lane.b32.xlu1 %v1737_v20, %s1592_s23 }
 0x2b7   :  { %v417_v46 = vpop.permute.xlu1 %416 }
 0x2b8   :  { %1338 = vmatmul.mubr.msk.f32.vlgmr.msra.gmra.mrb[4].mxu0 %vm51_vm2, %v417_v46 }
 0x2b9   :  { %1359 = vmatprep.mubr.msk.f32.mxu0 %vm1587_vm1, %v1586_v2  ;;  %1436 = vmatpush3.bf16.msra.mxu0 %v1435_v54 }
 0x2ba   :  { %1437 = vmatprep.subr.bf16.mxu0 %v1588_v8 }
 0x2bb   :  { %v420_v59 = vpop.permute.xlu1 %419 }
 0x2bd   :  { %1439 = vmatpush3.bf16.msra.mxu0 %v1438_v58 }
 0x2be   :  { %1440 = vmatprep.subr.bf16.mxu0 %v1588_v8 }
 0x38b   :  { %v493_v60 = vpop.f32.mrb[4].mxu0 }
 0x38c   :  { %v494_v61 = vadd.f32 %v493_v60, %v420_v59  ;;  %v1339_v62 = vpop.f32.mrb[5].mxu0  ;;  %v146_v59 = vld [vmem:[%s1994_s5 + $0x68] sm:$0xff]  ;;  %v161_v60 = vld [vmem:[%s1996_s7 + $0x60] sm:$0xff] }
 0x38d   :  { %v162_v62 = vld [vmem:[%s1996_s7 + $0x68] sm:$0xff] }
 0x38e   :  { %1480 = vtanh.f32 %v494_v61 }
 0x398   :  { %v1481_v63 = vpop.eup %1480 }
 0x399   :  { %1349 = vmatmul.mubr.msk.f32.vlgmr.msra.gmra.mrb[4].mxu1 %vm248_vm3, %v1481_v63  ;;  %1360 = vmatmul.mubr.msk.f32.vlgmr.msra.gmra.mrb[6].mxu0 %vm248_vm3, %v1481_v63  ;;  %v148_v63 = vld [vmem:[%s1994_s5 + $0x78] sm:$0xff] }
 0x39a   :  { %1364 = vmatprep.mubr.msk.f32.mxu1 %vm1587_vm1, %v1586_v2  ;;  %1375 = vmatprep.mubr.msk.f32.mxu0 %vm1587_vm1, %v1586_v2 }
 0x39b   :  { %1363 = vmatpush3.msk.msra.mxu1 %vm55_vm0, %v131_v0  ;;  %v1459_v0 = vpack.c.bf16 %v162_v62, %v161_v60 }
 0x39c   :  { %1446 = vmatprep.subr.bf16.mxu1 %v1588_v8 }
 0x46c   :  { %v571_v5 = vpop.f32.mrb[4].mxu1  ;;  %v645_v6 = vpop.f32.mrb[6].mxu0 }
 0x46d   :  { %v1824_v7 = vadd.f32 %v571_v5, %v501_v3  ;;  %v1350_v9 = vpop.f32.mrb[5].mxu1  ;;  %v1361_v10 = vpop.f32.mrb[7].mxu0  ;;  %v646_v14 = vadd.f32 %v645_v6, %v578_v12  ;;  %v164_v3 = vld [vmem:[%s1996_s7 + $0x78] sm:$0xff] }
 0x46e   :  { %v1462_v6 = vpack.c.bf16 %v164_v3, %v163_v1 }
 0x46f   :  { %v649_v11 = vmul.f32 1.442695, %v1824_v7  ;;  %v655_v57 = vsel %vm51_vm2, %v1824_v7, 0.0 }
 0x471   :  { %1482 = vpow2.f32 %v649_v11 }
 0x47b   :  { %v1483_v13 = vpop.eup %1482 }
 0x47c   :  { %v651_v15 = vmul.f32 %v1483_v13, %v1688_v4  ;;  %v141_v4 = vld [vmem:[%s1994_s5 + $0x40] sm:$0xff]  ;;  %v992_v13 = vsub.s32 3, %v1746_v27 }
 0x47d   :  { %v1441_v19 = vpack.c.bf16 %v142_v17, %v141_v4 }
 0x47e   :  { %v1829_v16 = vadd.f32 %v651_v15, %v646_v14  ;;  %v993_v14 = vrot.slane %v1752_v29, %v992_v13 }
 0x47f   :  { %1442 = vmatpush3.bf16.msra.mxu0 %v1441_v19 }
 0x480   :  { %653 = vst.msk [vmem:[#allocation4] sm:$0xff] %vm51_vm2, %v1829_v16  ;;  %902 = vst.msk [vmem:[#allocation6] sm:$0xff] %vm51_vm2, %v1829_v16  ;;  %1365 = vmatmul.mubr.msk.f32.vlgmr.msra.gmra.mrb[6].mxu1 %vm51_vm2, %v1829_v16  ;;  %1443 = vmatprep.subr.bf16.mxu0 %v1588_v8 }
 0x481   :  { %1386 = vmatprep.mubr.msk.f32.mxu1 %vm1587_vm1, %v1586_v2  ;;  %654 = vst.msk [vmem:[#allocation4] sm:$0xff] %vm409_vm4, %v1773_v45  ;;  %1448 = vmatpush3.bf16.msra.mxu1 %v1447_v24  ;;  %v1070_v24 = vrot.slane %v1761_v37, %v992_v13 }
 0x482   :  { %1449 = vmatprep.subr.bf16.mxu1 %v1588_v8 }
 0x483   :  { %1445 = vmatpush3.bf16.msra.mxu0 %v1444_v28 }
 0x484   :  { %1389 = vmatprep.subr.mxu0 %v1586_v2 }
 0x485   :  { %1451 = vmatpush3.bf16.msra.mxu1 %v1450_v30 }
 0x486   :  { %1452 = vmatprep.subr.bf16.mxu1 %v1588_v8 }
 0x553   :  { %v734_v32 = vpop.f32.mrb[6].mxu1 }
 0x554   :  { %v735_v34 = vadd.f32 %v734_v32, %v660_v31  ;;  %v1366_v35 = vpop.f32.mrb[7].mxu1 }
 0x556   :  { %1484 = vtanh.f32 %v735_v34 }
 0x560   :  { %v1485_v36 = vpop.eup %1484 }
 0x561   :  { %1376 = vmatmul.mubr.msk.f32.vlgmr.msra.gmra.mrb[8].mxu0 %vm248_vm3, %v1485_v36  ;;  %1387 = vmatmul.mubr.msk.f32.vlgmr.msra.gmra.mrb[8].mxu1 %vm248_vm3, %v1485_v36 }
 0x562   :  { %1391 = vmatprep.mubr.msk.f32.mxu0 %vm1587_vm1, %v1586_v2  ;;  %1402 = vmatprep.mubr.msk.f32.mxu1 %vm1587_vm1, %v1586_v2 }
 0x563   :  { %1390 = vmatpush3.msk.msra.mxu0 %vm55_vm0, %v132_v52 }
 0x564   :  { %1458 = vmatprep.subr.bf16.mxu0 %v1588_v8 }
 0x634   :  { %v812_v41 = vpop.f32.mrb[8].mxu0  ;;  %v886_v42 = vpop.f32.mrb[8].mxu1 }
 0x635   :  { %v813_v43 = vadd.f32 %v812_v41, %v742_v39  ;;  %v887_v44 = vadd.f32 %v886_v42, %v819_v40  ;;  %v1377_v46 = vpop.f32.mrb[9].mxu0  ;;  %v1388_v47 = vpop.f32.mrb[9].mxu1 }
 0x637   :  { %v890_v48 = vmul.f32 1.442695, %v813_v43  ;;  %898 = vrot.lane.b32.xlu0 %v887_v44, %s1589_s6  ;;  %v904_v51 = vsel %vm51_vm2, %v813_v43, 0.0 }
 0x639   :  { %1486 = vpow2.f32 %v890_v48 }
 0x63b   :  { %911 = vrot.lane.b32.xlu0 %v1737_v20, %s1593_s0 }
 0x643   :  { %v1487_v49 = vpop.eup %1486 }
 0x644   :  { %893 = vrot.lane.b32.xlu1 %v1487_v49, %s1589_s6 }
 0x65a   :  { %412 = vadd.xlane.f32.xlu0 %v411_v50 }
 0x65e   :  { %905 = vadd.xlane.f32.xlu0 %v904_v51 }
 0x6a9   :  { %v899_v54 = vpop.permute.xlu0 %898 }
 0x6ad   :  { %v912_v7 = vpop.permute.xlu0 %911 }
 0x6b6   :  { %v894_v53 = vpop.permute.xlu1 %893 }
 0x6b7   :  { %v896_v20 = vmul.f32 %v894_v53, %v1773_v45  ;;  %v145_v45 = vld [vmem:[%s1994_s5 + $0x60] sm:$0xff] }
 0x6b8   :  { %v1453_v61 = vpack.c.bf16 %v146_v59, %v145_v45 }
 0x6b9   :  { %v901_v55 = vadd.f32 %v899_v54, %v896_v20 }
 0x6ba   :  { %1454 = vmatpush3.bf16.msra.mxu1 %v1453_v61 }
 0x6bb   :  { %909 = vrot.lane.b32.xlu1 %v901_v55, %s1591_s8  ;;  %v1156_v33 = vmul.f32 -0.5, %v901_v55  ;;  %903 = vst.msk [vmem:[#allocation6] sm:$0xff] %vm409_vm4, %v901_v55  ;;  %1455 = vmatprep.subr.bf16.mxu1 %v1588_v8 }
 0x6bd   :  { %v1157_v56 = vmul.f32 %v1156_v33, %v901_v55 }
 0x6bf   :  { %1159 = vrot.lane.b32.xlu1 %v1157_v56, %s1591_s8 }
 0x6e3   :  { %656 = vadd.xlane.f32.xlu1 %v655_v57 }
 0x72d   :  { %v910_v58 = vpop.permute.xlu1 %909 }
 0x72e   :  { %1392 = vmatmul.mubr.msk.f32.vlgmr.msra.gmra.mrb[10].mxu0 %vm51_vm2, %v910_v58 }
 0x72f   :  { %1413 = vmatprep.mubr.msk.f32.mxu0 %vm1587_vm1, %v1586_v2  ;;  %v147_v2 = vld [vmem:[%s1994_s5 + $0x70] sm:$0xff]  ;;  %1460 = vmatpush3.bf16.msra.mxu0 %v1459_v0  ;;  %s1594_s5 = smov [#allocation4]  }
 0x730   :  { %v1456_v5 = vpack.c.bf16 %v148_v63, %v147_v2  ;;  %1461 = vmatprep.subr.bf16.mxu0 %v1588_v8  ;;  %s1186_s7 = sshll.u32 %s1594_s5, 4  ;;  %s1187_s7 = int_to_ptr.vmem [resolvable:$true] %s1186_s7 }
 0x731   :  { %v1160_v22 = vpop.permute.xlu1 %1159  ;;  %s1492_s4 = scalar_lea.vmem %s1187_s7, 128  ;;  %p1497_p1 = scmp.lt.s32.totalorder %s1187_s7, %s1187_s7 }
 0x732   :  { %1457 = vmatpush3.bf16.msra.mxu1 %v1456_v5  ;;  %v1162_v23 = vsel %vm51_vm2, %v1160_v22, 0.0  ;;  %p1493_p0 = scmp.ne.s32.totalorder %s1187_s7, %s1492_s4  ;;  %p1498_p2 = scmp.lt.s32.totalorder %s1492_s4, %s1492_s4 }
 0x733   :  { %1463 = vmatpush3.bf16.msra.mxu0 %v1462_v6 }
 0x734   :  { %p1499_p3 = por %p1498_p2, %p1497_p1 }
 0x736   :  { %p1500_p4 = pnand %p1499_p3, %p1493_p0 }
 0x801   :  { %v985_v9 = vpop.f32.mrb[10].mxu0 }
 0x802   :  { %v986_v10 = vadd.f32 %v985_v9, %v912_v7  ;;  %v1393_v11 = vpop.f32.mrb[11].mxu0 }
 0x804   :  { %1488 = vtanh.f32 %v986_v10 }
 0x80e   :  { %v1489_v12 = vpop.eup %1488 }
 0x80f   :  { %1403 = vmatmul.mubr.msk.f32.vlgmr.msra.gmra.mrb[10].mxu1 %vm248_vm3, %v1489_v12  ;;  %1414 = vmatmul.mubr.msk.f32.vlgmr.msra.gmra.mrb[12].mxu0 %vm248_vm3, %v1489_v12 }
 0x8e2   :  { %v1063_v15 = vpop.f32.mrb[10].mxu1  ;;  %v1137_v4 = vpop.f32.mrb[12].mxu0 }
 0x8e3   :  { %v1064_v17 = vadd.f32 %v1063_v15, %v993_v14  ;;  %v1404_v8 = vpop.f32.mrb[11].mxu1  ;;  %v1415_v18 = vpop.f32.mrb[13].mxu0  ;;  %v1138_v27 = vadd.f32 %v1137_v4, %v1070_v24 }
 0x8e5   :  { %v1141_v19 = vmul.f32 1.442695, %v1064_v17  ;;  %v1147_v21 = vsel %vm51_vm2, %v1064_v17, 0.0 }
 0x8e6   :  { %1148 = vadd.xlane.f32.xlu0 %v1147_v21 }
 0x8e7   :  { %1490 = vpow2.f32 %v1141_v19 }
 0x8ea   :  { %1163 = vadd.xlane.f32.xlu0 %v1162_v23 }
 0x8f1   :  { %v1491_v25 = vpop.eup %1490 }
 0x8f2   :  { %v1143_v29 = vmul.f32 %v1491_v25, %v1829_v16 }
 0x8f4   :  { %v1144_v26 = vadd.f32 %v1143_v29, %v1138_v27 }
 0x8f6   :  { %1145 = vst.msk [vmem:[#allocation7] sm:$0xff] %vm51_vm2, %v1144_v26  ;;  %v1151_v28 = vmul.f32 -0.5, %v1144_v26 }
 0x8f7   :  { %1146 = vst.msk [vmem:[#allocation7] sm:$0xff] %vm409_vm4, %v901_v55 }
 0x8f8   :  { %v1152_v30 = vmul.f32 %v1151_v28, %v1144_v26 }
 0x8fa   :  { %v1153_v31 = vsel %vm51_vm2, %v1152_v30, 0.0 }
 0x8fb   :  { %1154 = vadd.xlane.f32.xlu1 %v1153_v31 }
 0x8fc   :  { %1503 = shalt.err (!%p1500_p4)
}
 0x8fd   :  { %s1504_s1 = scalar_lea.hbm %s1999_s10, 128 }
 0x8fe   :  { %p1505_p5 = scmp.ne.s32.totalorder %s1999_s10, %s1504_s1  ;;  %p1508_p6 = scmp.lt.u32.totalorder %s1504_s1, %s1999_s10 }
 0x900   :  { %p1510_p7 = pnand %p1508_p6, %p1505_p5 }
 0x902   :  { %1513 = shalt.err (!%p1510_p7)
}
 0x903   :  { %1189 = dma.vmem_to_hbm [thread:$0]  %s1187_s7, 128, %s1999_s10, [#allocation5]  }
 0x904   :  { %s1514_s8 = scalar_lea.vmem %s1177_s19, 128  ;;  %p1519_p9 = scmp.lt.s32.totalorder %s1177_s19, %s1177_s19 }
 0x905   :  { %p1515_p8 = scmp.ne.s32.totalorder %s1177_s19, %s1514_s8  ;;  %p1520_p10 = scmp.lt.s32.totalorder %s1514_s8, %s1514_s8 }
 0x907   :  { %p1521_p11 = por %p1520_p10, %p1519_p9 }
 0x909   :  { %p1522_p12 = pnand %p1521_p11, %p1515_p8 }
 0x90b   :  { %1525 = shalt.err (!%p1522_p12)
}
 0x90c   :  { %s1526_s26 = scalar_lea.hbm %s1998_s9, 128 }
 0x90d   :  { %p1527_p13 = scmp.ne.s32.totalorder %s1998_s9, %s1526_s26  ;;  %p1530_p0 = scmp.lt.u32.totalorder %s1526_s26, %s1998_s9 }
 0x90f   :  { %p1532_p1 = pnand %p1530_p0, %p1527_p13 }
 0x911   :  { %1535 = shalt.err (!%p1532_p1)
}
 0x912   :  { %1179 = dma.vmem_to_hbm [thread:$0]  %s1177_s19, 128, %s1998_s9, [#allocation3]  }
 0x913   :  { %s1596_s16 = smov [#allocation6]   ;;  %s1597_s5 = smov [#allocation7]  }
 0x914   :  { %s1196_s17 = sshll.u32 %s1596_s16, 4  ;;  %s1206_s7 = sshll.u32 %s1597_s5, 4  ;;  %s1197_s17 = int_to_ptr.vmem [resolvable:$true] %s1196_s17  ;;  %s1207_s7 = int_to_ptr.vmem [resolvable:$true] %s1206_s7 }
 0x915   :  { %s1536_s18 = scalar_lea.vmem %s1197_s17, 128  ;;  %p1541_p3 = scmp.lt.s32.totalorder %s1197_s17, %s1197_s17 }
 0x916   :  { %p1537_p2 = scmp.ne.s32.totalorder %s1197_s17, %s1536_s18  ;;  %p1542_p4 = scmp.lt.s32.totalorder %s1536_s18, %s1536_s18 }
 0x918   :  { %p1543_p5 = por %p1542_p4, %p1541_p3 }
 0x91a   :  { %p1544_p6 = pnand %p1543_p5, %p1537_p2 }
 0x91c   :  { %1547 = shalt.err (!%p1544_p6)
}
 0x91d   :  { %s1548_s0 = scalar_lea.hbm %s2000_s11, 128 }
 0x91e   :  { %p1549_p7 = scmp.ne.s32.totalorder %s2000_s11, %s1548_s0  ;;  %p1552_p8 = scmp.lt.u32.totalorder %s1548_s0, %s2000_s11 }
 0x920   :  { %p1554_p9 = pnand %p1552_p8, %p1549_p7 }
 0x922   :  { %1557 = shalt.err (!%p1554_p9)
}
 0x923   :  { %1199 = dma.vmem_to_hbm [thread:$0]  %s1197_s17, 128, %s2000_s11, [#allocation5]  }
 0x924   :  { %s1558_s21 = scalar_lea.vmem %s1207_s7, 128  ;;  %p1563_p11 = scmp.lt.s32.totalorder %s1207_s7, %s1207_s7 }
 0x925   :  { %p1559_p10 = scmp.ne.s32.totalorder %s1207_s7, %s1558_s21  ;;  %p1564_p12 = scmp.lt.s32.totalorder %s1558_s21, %s1558_s21 }
 0x927   :  { %p1565_p13 = por %p1564_p12, %p1563_p11 }
 0x929   :  { %p1566_p0 = pnand %p1565_p13, %p1559_p10 }
 0x92b   :  { %1569 = shalt.err (!%p1566_p0)
}
 0x92c   :  { %s1570_s8 = scalar_lea.hbm %s2001_s12, 128 }
 0x92d   :  { %p1571_p1 = scmp.ne.s32.totalorder %s2001_s12, %s1570_s8  ;;  %p1574_p2 = scmp.lt.u32.totalorder %s1570_s8, %s2001_s12 }
 0x92f   :  { %p1576_p3 = pnand %p1574_p2, %p1571_p1 }
 0x931   :  { %1579 = shalt.err (!%p1576_p3)
}
 0x932   :  { %1209 = dma.vmem_to_hbm [thread:$0]  %s1207_s7, 128, %s2001_s12, [#allocation8]   ;;  %v413_v37 = vpop.xlane.xlu0 %412  ;;  %v657_v16 = vpop.xlane.xlu1 %656  ;;  %vm1167_vm5 = vcmask 7168  }
 0x933   :  { %v658_v32 = vadd.f32 %v657_v16, %v413_v37 }
 0x936   :  { %v906_v34 = vpop.xlane.xlu0 %905 }
 0x937   :  { %v907_v35 = vadd.f32 %v906_v34, %v658_v32 }
 0x973   :  { %v1149_v36 = vpop.xlane.xlu0 %1148 }
 0x974   :  { %v1150_v38 = vadd.f32 %v1149_v36, %v907_v35 }
 0x976   :  { %1169 = vst.msk [vmem:[%s2003_s14] sm:$0xff] %vm1167_vm5, %v1150_v38 }
 0x977   :  { %v1164_v39 = vpop.xlane.xlu0 %1163 }
 0x988   :  { %v1155_v40 = vpop.xlane.xlu1 %1154 }
 0x989   :  { %v1165_v41 = vadd.f32 %v1164_v39, %v1155_v40 }
 0x98b   :  { %v1252_v42 = vadd.f32 -7.351508, %v1165_v41 }
 0x98d   :  { %1168 = vst.msk [vmem:[%s2002_s13] sm:$0xff] %vm1167_vm5, %v1252_v42 }
 0x98e   :  { %1580 = dma.done.wait [#allocation3], 128  }
 0x98f   :  { %1581 = vsyncadd [#allocation3], 4294967168 }
 0x990   :  { %1582 = dma.done.wait [#allocation5], 256  }
 0x991   :  { %1583 = vsyncadd [#allocation5], 4294967040 }
 0x992   :  { %1584 = dma.done.wait [#allocation8], 128  }
 0x993   :  { %1585 = vsyncadd [#allocation8], 4294967168 }
 0x994   :  { %1230 = vsyncpa [#allocation3], 1 }
 0x995   :  { %1231 = vsyncpa [#allocation5], 1 }
 0x996   :  { %1232 = vsyncpa [#allocation8], 1 }

</bundles_post_ra>
